<compile_context>
chip_gen: v7x
topology: tpu7x:2x2x1
jax: 0.10.0
libtpu: 0.0.40
codegen_flags: <defaults>
</compile_context>

<pallas_src>
import functools

import jax
import jax.numpy as jnp
from jax.experimental import pallas as pl
from jax.experimental.pallas import tpu as pltpu

ENC_DIMS = [28 * 28, 128, 64, 12, 3]
DEC_DIMS = [3, 12, 64, 128, 28 * 28]
ENC_PAD = 128           # lane-dense padding for the 3-wide bottleneck output
DEFAULT_BLOCK_B = 2048  # batch tile; ~13 MiB of tiles/step -> fits 48 MiB VMEM budget


def _round_up(n, m):
    return ((n + m - 1) // m) * m


def _ae_kernel(x_ref,
               # encoder params (weights bf16, biases f32)
               ew1, eb1, ew2, eb2, ew3, eb3, ew4, eb4,
               # decoder params
               dw1, db1, dw2, db2, dw3, db3, dw4, db4,
               # outputs (bf16)
               enc_ref, dec_ref):
    """One batch tile of the full forward pass. Weights are VMEM-resident."""
    f32 = jnp.float32
    bf16 = jnp.bfloat16

    def layer(h_bf16, w_ref, b_ref):
        # bf16 MXU matmul, f32 accumulation, f32 bias add
        return jnp.dot(h_bf16, w_ref[...], preferred_element_type=f32) + b_ref[...]

    # ---------------- encoder ----------------
    h = x_ref[...].astype(bf16)                        # in-kernel cast: f32 HBM read only
    h = jnp.tanh(layer(h, ew1, eb1)).astype(bf16)      # (TB, 128)
    h = jnp.tanh(layer(h, ew2, eb2)).astype(bf16)      # (TB, 64)
    h = jnp.tanh(layer(h, ew3, eb3)).astype(bf16)      # (TB, 12)
    encoded_pad = layer(h, ew4, eb4)                   # (TB, 128) f32, cols >= 3 are 0
    enc_ref[...] = encoded_pad.astype(enc_ref.dtype)   # lane-dense bf16 store

    # ---------------- decoder ----------------
    d = encoded_pad.astype(bf16)                       # padded cols are exact zeros
    d = jnp.tanh(layer(d, dw1, db1)).astype(bf16)      # (TB, 12)
    d = jnp.tanh(layer(d, dw2, db2)).astype(bf16)      # (TB, 64)
    d = jnp.tanh(layer(d, dw3, db3)).astype(bf16)      # (TB, 128)
    d = layer(d, dw4, db4)                             # (TB, 784) f32
    dec_ref[...] = jax.nn.sigmoid(d).astype(dec_ref.dtype)


def _prep_params(params):
    """Cast weights to bf16, biases to f32, and pad the bottleneck layer to 128 lanes."""
    ws = [params[2 * i] for i in range(8)]
    bs = [params[2 * i + 1] for i in range(8)]
    # encoder last layer: (12, 3) -> (12, 128), bias (1, 3) -> (1, 128)
    ws[3] = jnp.pad(ws[3], ((0, 0), (0, ENC_PAD - ws[3].shape[1])))
    bs[3] = jnp.pad(bs[3], ((0, 0), (0, ENC_PAD - bs[3].shape[1])))
    # decoder first layer: (3, 12) -> (128, 12), zero rows contribute nothing
    ws[4] = jnp.pad(ws[4], ((0, ENC_PAD - ws[4].shape[0]), (0, 0)))
    prepped = []
    for w, b in zip(ws, bs):
        prepped += [w.astype(jnp.bfloat16), b.astype(jnp.float32)]
    return prepped


@functools.partial(jax.jit, static_argnames=("block_b",))
def autoencoder_forward(x, params, block_b=DEFAULT_BLOCK_B):
    """params: flat list [ew1, eb1, ..., ew4, eb4, dw1, db1, ..., dw4, db4] (f32).

    Weights are (in, out), biases (1, out). x is f32 (B, 784).
    Returns (encoded (B, 3) bf16, decoded (B, 784) bf16); values match the
    PyTorch module to bf16 precision. Upcast outside if a consumer needs f32.
    """
    B, d_in = x.shape
    d_out = DEC_DIMS[-1]

    # Batch tile: big (amortize ~0.35us/step grid overhead), but keep the grid
    # at >= 2 steps when the batch allows so the "parallel" axis can split
    # across v7x's two TensorCores.
    tb = min(block_b, B)
    if B >= 32:
        tb = min(tb, _round_up(pl.cdiv(B, 2), 16))
    grid = (pl.cdiv(B, tb),)

    prepped = _prep_params(params)

    # BlockSpecs: x / outputs tile over batch; params are resident (constant index).
    # (Params keep the default pipeline mode -- compile-safe; the extra buffer is
    #  only ~0.5 MiB of VMEM.)
    x_spec = pl.BlockSpec((tb, d_in), lambda i: (i, 0))
    param_specs = [pl.BlockSpec(p.shape, lambda i: (0, 0)) for p in prepped]
    enc_spec = pl.BlockSpec((tb, ENC_PAD), lambda i: (i, 0))
    dec_spec = pl.BlockSpec((tb, d_out), lambda i: (i, 0))

    out_shapes = (
        jax.ShapeDtypeStruct((B, ENC_PAD), jnp.bfloat16),  # padded encoded (bf16)
        jax.ShapeDtypeStruct((B, d_out), jnp.bfloat16),    # decoded (bf16)
    )

    # Advisory cost estimate (f32 input read, bf16 output writes).
    n_mac = sum(a * b for a, b in zip(ENC_DIMS[:-1], ENC_DIMS[1:])) + \
            sum(a * b for a, b in zip(DEC_DIMS[:-1], DEC_DIMS[1:]))
    param_bytes = sum(p.size * p.dtype.itemsize for p in prepped)
    cost = pl.CostEstimate(
        flops=2 * n_mac * B,
        transcendentals=B * (sum(ENC_DIMS[1:-1]) + sum(DEC_DIMS[1:-1]) + d_out),
        bytes_accessed=B * (d_in * 4 + ENC_PAD * 2 + d_out * 2) + param_bytes,
    )

    encoded_pad, decoded = pl.pallas_call(
        _ae_kernel,
        out_shape=out_shapes,
        grid=grid,
        in_specs=[x_spec] + param_specs,
        out_specs=(enc_spec, dec_spec),
        compiler_params=pltpu.CompilerParams(
            dimension_semantics=("parallel",),     # megacore batch split on v7x
            vmem_limit_bytes=48 << 20,             # headroom on v7x's 64 MiB VMEM;
                                                   # explicit raise needed on v5e (16 MiB default)
        ),
        cost_estimate=cost,
    )(x, *prepped)

    # Cheap bf16 slice back to (B, 3) to preserve the module's output shape.
    return encoded_pad[:, :ENC_DIMS[-1]], decoded


def init_params(key):
    """PyTorch Linear default init: U(-1/sqrt(fan_in), 1/sqrt(fan_in)); weights (in, out)."""
    params = []
    for dims in (ENC_DIMS, DEC_DIMS):
        for fan_in, fan_out in zip(dims[:-1], dims[1:]):
            key, kw, kb = jax.random.split(key, 3)
            bound = 1.0 / jnp.sqrt(fan_in)
            w = jax.random.uniform(kw, (fan_in, fan_out), jnp.float32, -bound, bound)
            b = jax.random.uniform(kb, (1, fan_out), jnp.float32, -bound, bound)
            params += [w, b]
    return params


def _ref_forward_f32(x, params):
    """Pure-JAX f32 reference (matches the PyTorch module numerics)."""
    h = x
    for i in range(4):
        h = h @ params[2 * i] + params[2 * i + 1]
        if i < 3:
            h = jnp.tanh(h)
    encoded = h
    d = encoded
    for i in range(4, 8):
        d = d @ params[2 * i] + params[2 * i + 1]
        if i < 7:
            d = jnp.tanh(d)
    return encoded, jax.nn.sigmoid(d)


def _ref_forward_bf16(x, params):
    """Pure-JAX reference emulating the kernel numerics (bf16 operands, f32 accum, bf16 out)."""
    bf16, f32 = jnp.bfloat16, jnp.float32

    def run(h, layer_ids):
        h = h.astype(bf16)
        for n, i in enumerate(layer_ids):
            w = params[2 * i].astype(bf16)
            b = params[2 * i + 1].astype(f32)
            h = jnp.dot(h, w, preferred_element_type=f32) + b
            if n < len(layer_ids) - 1:
                h = jnp.tanh(h).astype(bf16)
        return h

    encoded = run(x, [0, 1, 2, 3])
    decoded = jax.nn.sigmoid(run(encoded, [4, 5, 6, 7]))
    return encoded.astype(bf16), decoded.astype(bf16)


if __name__ == "__main__":
    key = jax.random.PRNGKey(0)
    key, kx = jax.random.split(key)

    B = 8
    x = jax.random.uniform(kx, (B, 28 * 28), jnp.float32)  # flattened MNIST-like input

    params = init_params(key)

    encoded, decoded = autoencoder_forward(x, params)
    jax.block_until_ready((encoded, decoded))

    assert encoded.shape == (B, ENC_DIMS[-1]) and decoded.shape == (B, DEC_DIMS[-1])

    # numerics check vs bf16-emulating reference (both sides bf16 outputs)
    enc_b, dec_b = _ref_forward_bf16(x, params)
    assert jnp.allclose(encoded.astype(jnp.float32), enc_b.astype(jnp.float32),
                        atol=2e-2, rtol=2e-2)
    assert jnp.allclose(decoded.astype(jnp.float32), dec_b.astype(jnp.float32),
                        atol=2e-2, rtol=2e-2)

    # semantic sanity check vs full-f32 PyTorch-equivalent reference
    enc_f, dec_f = _ref_forward_f32(x, params)
    assert jnp.allclose(encoded.astype(jnp.float32), enc_f, atol=8e-2)
    assert jnp.allclose(decoded.astype(jnp.float32), dec_f, atol=8e-2)

    print("KERNEL_OK")
</pallas_src>

<mosaic_0001>
module attributes {stable_mosaic.version = 11 : i64} {
  func.func @_ae_kernel(%arg0: i32, %arg1: memref<8x784xf32, #tpu.memory_space<vmem>>, %arg2: memref<784x128xbf16, #tpu.memory_space<vmem>>, %arg3: memref<1x128xf32, #tpu.memory_space<vmem>>, %arg4: memref<128x64xbf16, #tpu.memory_space<vmem>>, %arg5: memref<1x64xf32, #tpu.memory_space<vmem>>, %arg6: memref<64x12xbf16, #tpu.memory_space<vmem>>, %arg7: memref<1x12xf32, #tpu.memory_space<vmem>>, %arg8: memref<12x128xbf16, #tpu.memory_space<vmem>>, %arg9: memref<1x128xf32, #tpu.memory_space<vmem>>, %arg10: memref<128x12xbf16, #tpu.memory_space<vmem>>, %arg11: memref<1x12xf32, #tpu.memory_space<vmem>>, %arg12: memref<12x64xbf16, #tpu.memory_space<vmem>>, %arg13: memref<1x64xf32, #tpu.memory_space<vmem>>, %arg14: memref<64x128xbf16, #tpu.memory_space<vmem>>, %arg15: memref<1x128xf32, #tpu.memory_space<vmem>>, %arg16: memref<128x784xbf16, #tpu.memory_space<vmem>>, %arg17: memref<1x784xf32, #tpu.memory_space<vmem>>, %arg18: memref<8x128xbf16, #tpu.memory_space<vmem>>, %arg19: memref<8x784xbf16, #tpu.memory_space<vmem>>) attributes {dimension_semantics = [#tpu.dimension_semantics<parallel>], iteration_bounds = array<i64: 1>, scalar_prefetch = 0 : i64, scratch_operands = 0 : i64, tpu.core_type = #tpu.core_type<tc>, window_params = [{transform_indices = @transform_0, window_bounds = array<i64: 8, 784>}, {pipeline_mode = #tpu.pipeline_mode<synchronous>, transform_indices = @transform_1, window_bounds = array<i64: 784, 128>}, {pipeline_mode = #tpu.pipeline_mode<synchronous>, transform_indices = @transform_2, window_bounds = array<i64: 1, 128>}, {pipeline_mode = #tpu.pipeline_mode<synchronous>, transform_indices = @transform_3, window_bounds = array<i64: 128, 64>}, {pipeline_mode = #tpu.pipeline_mode<synchronous>, transform_indices = @transform_4, window_bounds = array<i64: 1, 64>}, {pipeline_mode = #tpu.pipeline_mode<synchronous>, transform_indices = @transform_5, window_bounds = array<i64: 64, 12>}, {pipeline_mode = #tpu.pipeline_mode<synchronous>, transform_indices = @transform_6, window_bounds = array<i64: 1, 12>}, {pipeline_mode = #tpu.pipeline_mode<synchronous>, transform_indices = @transform_7, window_bounds = array<i64: 12, 128>}, {pipeline_mode = #tpu.pipeline_mode<synchronous>, transform_indices = @transform_8, window_bounds = array<i64: 1, 128>}, {pipeline_mode = #tpu.pipeline_mode<synchronous>, transform_indices = @transform_9, window_bounds = array<i64: 128, 12>}, {pipeline_mode = #tpu.pipeline_mode<synchronous>, transform_indices = @transform_10, window_bounds = array<i64: 1, 12>}, {pipeline_mode = #tpu.pipeline_mode<synchronous>, transform_indices = @transform_11, window_bounds = array<i64: 12, 64>}, {pipeline_mode = #tpu.pipeline_mode<synchronous>, transform_indices = @transform_12, window_bounds = array<i64: 1, 64>}, {pipeline_mode = #tpu.pipeline_mode<synchronous>, transform_indices = @transform_13, window_bounds = array<i64: 64, 128>}, {pipeline_mode = #tpu.pipeline_mode<synchronous>, transform_indices = @transform_14, window_bounds = array<i64: 1, 128>}, {pipeline_mode = #tpu.pipeline_mode<synchronous>, transform_indices = @transform_15, window_bounds = array<i64: 128, 784>}, {pipeline_mode = #tpu.pipeline_mode<synchronous>, transform_indices = @transform_16, window_bounds = array<i64: 1, 784>}, {transform_indices = @transform_17, window_bounds = array<i64: 8, 128>}, {transform_indices = @transform_18, window_bounds = array<i64: 8, 784>}]} {
    %c0 = arith.constant 0 : index
    %c0_0 = arith.constant 0 : index
    %0 = vector.load %arg1[%c0, %c0_0] : memref<8x784xf32, #tpu.memory_space<vmem>>, vector<8x784xf32>
    %1 = arith.truncf %0 : vector<8x784xf32> to vector<8x784xbf16>
    %c0_1 = arith.constant 0 : index
    %c0_2 = arith.constant 0 : index
    %2 = vector.load %arg2[%c0_1, %c0_2] : memref<784x128xbf16, #tpu.memory_space<vmem>>, vector<784x128xbf16>
    %cst = arith.constant dense<0.000000e+00> : vector<8x128xf32>
    %3 = tpu.matmul %1, %2, %cst {dimension_numbers = #tpu.dot_dimension_numbers<[1], [0], [0], [1], [0, 0, 1, 1], [], []>} : vector<8x784xbf16>, vector<784x128xbf16>, vector<8x128xf32> -> vector<8x128xf32>
    %c0_3 = arith.constant 0 : index
    %c0_4 = arith.constant 0 : index
    %4 = vector.load %arg3[%c0_3, %c0_4] : memref<1x128xf32, #tpu.memory_space<vmem>>, vector<1x128xf32>
    %5 = vector.broadcast %4 : vector<1x128xf32> to vector<8x128xf32>
    %6 = arith.addf %3, %5 : vector<8x128xf32>
    %7 = math.tanh %6 : vector<8x128xf32>
    %8 = arith.truncf %7 : vector<8x128xf32> to vector<8x128xbf16>
    %c0_5 = arith.constant 0 : index
    %c0_6 = arith.constant 0 : index
    %9 = vector.load %arg4[%c0_5, %c0_6] : memref<128x64xbf16, #tpu.memory_space<vmem>>, vector<128x64xbf16>
    %cst_7 = arith.constant dense<0.000000e+00> : vector<8x64xf32>
    %10 = tpu.matmul %8, %9, %cst_7 {dimension_numbers = #tpu.dot_dimension_numbers<[1], [0], [0], [1], [0, 0, 1, 1], [], []>} : vector<8x128xbf16>, vector<128x64xbf16>, vector<8x64xf32> -> vector<8x64xf32>
    %c0_8 = arith.constant 0 : index
    %c0_9 = arith.constant 0 : index
    %11 = vector.load %arg5[%c0_8, %c0_9] : memref<1x64xf32, #tpu.memory_space<vmem>>, vector<1x64xf32>
    %12 = vector.broadcast %11 : vector<1x64xf32> to vector<8x64xf32>
    %13 = arith.addf %10, %12 : vector<8x64xf32>
    %14 = math.tanh %13 : vector<8x64xf32>
    %15 = arith.truncf %14 : vector<8x64xf32> to vector<8x64xbf16>
    %c0_10 = arith.constant 0 : index
    %c0_11 = arith.constant 0 : index
    %16 = vector.load %arg6[%c0_10, %c0_11] : memref<64x12xbf16, #tpu.memory_space<vmem>>, vector<64x12xbf16>
    %cst_12 = arith.constant dense<0.000000e+00> : vector<8x12xf32>
    %17 = tpu.matmul %15, %16, %cst_12 {dimension_numbers = #tpu.dot_dimension_numbers<[1], [0], [0], [1], [0, 0, 1, 1], [], []>} : vector<8x64xbf16>, vector<64x12xbf16>, vector<8x12xf32> -> vector<8x12xf32>
    %c0_13 = arith.constant 0 : index
    %c0_14 = arith.constant 0 : index
    %18 = vector.load %arg7[%c0_13, %c0_14] : memref<1x12xf32, #tpu.memory_space<vmem>>, vector<1x12xf32>
    %19 = vector.broadcast %18 : vector<1x12xf32> to vector<8x12xf32>
    %20 = arith.addf %17, %19 : vector<8x12xf32>
    %21 = math.tanh %20 : vector<8x12xf32>
    %22 = arith.truncf %21 : vector<8x12xf32> to vector<8x12xbf16>
    %c0_15 = arith.constant 0 : index
    %c0_16 = arith.constant 0 : index
    %23 = vector.load %arg8[%c0_15, %c0_16] : memref<12x128xbf16, #tpu.memory_space<vmem>>, vector<12x128xbf16>
    %cst_17 = arith.constant dense<0.000000e+00> : vector<8x128xf32>
    %24 = tpu.matmul %22, %23, %cst_17 {dimension_numbers = #tpu.dot_dimension_numbers<[1], [0], [0], [1], [0, 0, 1, 1], [], []>} : vector<8x12xbf16>, vector<12x128xbf16>, vector<8x128xf32> -> vector<8x128xf32>
    %c0_18 = arith.constant 0 : index
    %c0_19 = arith.constant 0 : index
    %25 = vector.load %arg9[%c0_18, %c0_19] : memref<1x128xf32, #tpu.memory_space<vmem>>, vector<1x128xf32>
    %26 = vector.broadcast %25 : vector<1x128xf32> to vector<8x128xf32>
    %27 = arith.addf %24, %26 : vector<8x128xf32>
    %28 = arith.truncf %27 : vector<8x128xf32> to vector<8x128xbf16>
    %c0_20 = arith.constant 0 : index
    %c0_21 = arith.constant 0 : index
    %29 = vector.load %arg18[%c0_20, %c0_21] : memref<8x128xbf16, #tpu.memory_space<vmem>>, vector<8x128xbf16>
    tpu.vector_store %arg18[%c0_20, %c0_21], %28 {strides = array<i32>} : memref<8x128xbf16, #tpu.memory_space<vmem>>, vector<8x128xbf16>,
    %30 = arith.truncf %27 : vector<8x128xf32> to vector<8x128xbf16>
    %c0_22 = arith.constant 0 : index
    %c0_23 = arith.constant 0 : index
    %31 = vector.load %arg10[%c0_22, %c0_23] : memref<128x12xbf16, #tpu.memory_space<vmem>>, vector<128x12xbf16>
    %cst_24 = arith.constant dense<0.000000e+00> : vector<8x12xf32>
    %32 = tpu.matmul %30, %31, %cst_24 {dimension_numbers = #tpu.dot_dimension_numbers<[1], [0], [0], [1], [0, 0, 1, 1], [], []>} : vector<8x128xbf16>, vector<128x12xbf16>, vector<8x12xf32> -> vector<8x12xf32>
    %c0_25 = arith.constant 0 : index
    %c0_26 = arith.constant 0 : index
    %33 = vector.load %arg11[%c0_25, %c0_26] : memref<1x12xf32, #tpu.memory_space<vmem>>, vector<1x12xf32>
    %34 = vector.broadcast %33 : vector<1x12xf32> to vector<8x12xf32>
    %35 = arith.addf %32, %34 : vector<8x12xf32>
    %36 = math.tanh %35 : vector<8x12xf32>
    %37 = arith.truncf %36 : vector<8x12xf32> to vector<8x12xbf16>
    %c0_27 = arith.constant 0 : index
    %c0_28 = arith.constant 0 : index
    %38 = vector.load %arg12[%c0_27, %c0_28] : memref<12x64xbf16, #tpu.memory_space<vmem>>, vector<12x64xbf16>
    %cst_29 = arith.constant dense<0.000000e+00> : vector<8x64xf32>
    %39 = tpu.matmul %37, %38, %cst_29 {dimension_numbers = #tpu.dot_dimension_numbers<[1], [0], [0], [1], [0, 0, 1, 1], [], []>} : vector<8x12xbf16>, vector<12x64xbf16>, vector<8x64xf32> -> vector<8x64xf32>
    %c0_30 = arith.constant 0 : index
    %c0_31 = arith.constant 0 : index
    %40 = vector.load %arg13[%c0_30, %c0_31] : memref<1x64xf32, #tpu.memory_space<vmem>>, vector<1x64xf32>
    %41 = vector.broadcast %40 : vector<1x64xf32> to vector<8x64xf32>
    %42 = arith.addf %39, %41 : vector<8x64xf32>
    %43 = math.tanh %42 : vector<8x64xf32>
    %44 = arith.truncf %43 : vector<8x64xf32> to vector<8x64xbf16>
    %c0_32 = arith.constant 0 : index
    %c0_33 = arith.constant 0 : index
    %45 = vector.load %arg14[%c0_32, %c0_33] : memref<64x128xbf16, #tpu.memory_space<vmem>>, vector<64x128xbf16>
    %cst_34 = arith.constant dense<0.000000e+00> : vector<8x128xf32>
    %46 = tpu.matmul %44, %45, %cst_34 {dimension_numbers = #tpu.dot_dimension_numbers<[1], [0], [0], [1], [0, 0, 1, 1], [], []>} : vector<8x64xbf16>, vector<64x128xbf16>, vector<8x128xf32> -> vector<8x128xf32>
    %c0_35 = arith.constant 0 : index
    %c0_36 = arith.constant 0 : index
    %47 = vector.load %arg15[%c0_35, %c0_36] : memref<1x128xf32, #tpu.memory_space<vmem>>, vector<1x128xf32>
    %48 = vector.broadcast %47 : vector<1x128xf32> to vector<8x128xf32>
    %49 = arith.addf %46, %48 : vector<8x128xf32>
    %50 = math.tanh %49 : vector<8x128xf32>
    %51 = arith.truncf %50 : vector<8x128xf32> to vector<8x128xbf16>
    %c0_37 = arith.constant 0 : index
    %c0_38 = arith.constant 0 : index
    %52 = vector.load %arg16[%c0_37, %c0_38] : memref<128x784xbf16, #tpu.memory_space<vmem>>, vector<128x784xbf16>
    %cst_39 = arith.constant dense<0.000000e+00> : vector<8x784xf32>
    %53 = tpu.matmul %51, %52, %cst_39 {dimension_numbers = #tpu.dot_dimension_numbers<[1], [0], [0], [1], [0, 0, 1, 1], [], []>} : vector<8x128xbf16>, vector<128x784xbf16>, vector<8x784xf32> -> vector<8x784xf32>
    %c0_40 = arith.constant 0 : index
    %c0_41 = arith.constant 0 : index
    %54 = vector.load %arg17[%c0_40, %c0_41] : memref<1x784xf32, #tpu.memory_space<vmem>>, vector<1x784xf32>
    %55 = vector.broadcast %54 : vector<1x784xf32> to vector<8x784xf32>
    %56 = arith.addf %53, %55 : vector<8x784xf32>
    %57 = arith.negf %56 : vector<8x784xf32>
    %58 = math.exp %57 : vector<8x784xf32>
    %cst_42 = arith.constant 1.000000e+00 : f32
    %59 = vector.broadcast %cst_42 : f32 to vector<8x784xf32>
    %60 = arith.addf %59, %58 : vector<8x784xf32>
    %61 = arith.divf %59, %60 : vector<8x784xf32>
    %62 = arith.truncf %61 : vector<8x784xf32> to vector<8x784xbf16>
    %c0_43 = arith.constant 0 : index
    %c0_44 = arith.constant 0 : index
    %63 = vector.load %arg19[%c0_43, %c0_44] : memref<8x784xbf16, #tpu.memory_space<vmem>>, vector<8x784xbf16>
    tpu.vector_store %arg19[%c0_43, %c0_44], %62 {strides = array<i32>} : memref<8x784xbf16, #tpu.memory_space<vmem>>, vector<8x784xbf16>,
    return
  }
  func.func @transform_0(%arg0: i32) -> (i32, i32) {
    %c0_i32 = arith.constant 0 : i32
    %c0_i32_0 = arith.constant 0 : i32
    return %arg0, %c0_i32 : i32, i32
  }
  func.func @transform_1(%arg0: i32) -> (i32, i32) {
    %c0_i32 = arith.constant 0 : i32
    %c0_i32_0 = arith.constant 0 : i32
    %c0_i32_1 = arith.constant 0 : i32
    return %c0_i32, %c0_i32_0 : i32, i32
  }
  func.func @transform_2(%arg0: i32) -> (i32, i32) {
    %c0_i32 = arith.constant 0 : i32
    %c0_i32_0 = arith.constant 0 : i32
    %c0_i32_1 = arith.constant 0 : i32
    return %c0_i32, %c0_i32_0 : i32, i32
  }
  func.func @transform_3(%arg0: i32) -> (i32, i32) {
    %c0_i32 = arith.constant 0 : i32
    %c0_i32_0 = arith.constant 0 : i32
    %c0_i32_1 = arith.constant 0 : i32
    return %c0_i32, %c0_i32_0 : i32, i32
  }
  func.func @transform_4(%arg0: i32) -> (i32, i32) {
    %c0_i32 = arith.constant 0 : i32
    %c0_i32_0 = arith.constant 0 : i32
    %c0_i32_1 = arith.constant 0 : i32
    return %c0_i32, %c0_i32_0 : i32, i32
  }
  func.func @transform_5(%arg0: i32) -> (i32, i32) {
    %c0_i32 = arith.constant 0 : i32
    %c0_i32_0 = arith.constant 0 : i32
    %c0_i32_1 = arith.constant 0 : i32
    return %c0_i32, %c0_i32_0 : i32, i32
  }
  func.func @transform_6(%arg0: i32) -> (i32, i32) {
    %c0_i32 = arith.constant 0 : i32
    %c0_i32_0 = arith.constant 0 : i32
    %c0_i32_1 = arith.constant 0 : i32
    return %c0_i32, %c0_i32_0 : i32, i32
  }
  func.func @transform_7(%arg0: i32) -> (i32, i32) {
    %c0_i32 = arith.constant 0 : i32
    %c0_i32_0 = arith.constant 0 : i32
    %c0_i32_1 = arith.constant 0 : i32
    return %c0_i32, %c0_i32_0 : i32, i32
  }
  func.func @transform_8(%arg0: i32) -> (i32, i32) {
    %c0_i32 = arith.constant 0 : i32
    %c0_i32_0 = arith.constant 0 : i32
    %c0_i32_1 = arith.constant 0 : i32
    return %c0_i32, %c0_i32_0 : i32, i32
  }
  func.func @transform_9(%arg0: i32) -> (i32, i32) {
    %c0_i32 = arith.constant 0 : i32
    %c0_i32_0 = arith.constant 0 : i32
    %c0_i32_1 = arith.constant 0 : i32
    return %c0_i32, %c0_i32_0 : i32, i32
  }
  func.func @transform_10(%arg0: i32) -> (i32, i32) {
    %c0_i32 = arith.constant 0 : i32
    %c0_i32_0 = arith.constant 0 : i32
    %c0_i32_1 = arith.constant 0 : i32
    return %c0_i32, %c0_i32_0 : i32, i32
  }
  func.func @transform_11(%arg0: i32) -> (i32, i32) {
    %c0_i32 = arith.constant 0 : i32
    %c0_i32_0 = arith.constant 0 : i32
    %c0_i32_1 = arith.constant 0 : i32
    return %c0_i32, %c0_i32_0 : i32, i32
  }
  func.func @transform_12(%arg0: i32) -> (i32, i32) {
    %c0_i32 = arith.constant 0 : i32
    %c0_i32_0 = arith.constant 0 : i32
    %c0_i32_1 = arith.constant 0 : i32
    return %c0_i32, %c0_i32_0 : i32, i32
  }
  func.func @transform_13(%arg0: i32) -> (i32, i32) {
    %c0_i32 = arith.constant 0 : i32
    %c0_i32_0 = arith.constant 0 : i32
    %c0_i32_1 = arith.constant 0 : i32
    return %c0_i32, %c0_i32_0 : i32, i32
  }
  func.func @transform_14(%arg0: i32) -> (i32, i32) {
    %c0_i32 = arith.constant 0 : i32
    %c0_i32_0 = arith.constant 0 : i32
    %c0_i32_1 = arith.constant 0 : i32
    return %c0_i32, %c0_i32_0 : i32, i32
  }
  func.func @transform_15(%arg0: i32) -> (i32, i32) {
    %c0_i32 = arith.constant 0 : i32
    %c0_i32_0 = arith.constant 0 : i32
    %c0_i32_1 = arith.constant 0 : i32
    return %c0_i32, %c0_i32_0 : i32, i32
  }
  func.func @transform_16(%arg0: i32) -> (i32, i32) {
    %c0_i32 = arith.constant 0 : i32
    %c0_i32_0 = arith.constant 0 : i32
    %c0_i32_1 = arith.constant 0 : i32
    return %c0_i32, %c0_i32_0 : i32, i32
  }
  func.func @transform_17(%arg0: i32) -> (i32, i32) {
    %c0_i32 = arith.constant 0 : i32
    %c0_i32_0 = arith.constant 0 : i32
    return %arg0, %c0_i32 : i32, i32
  }
  func.func @transform_18(%arg0: i32) -> (i32, i32) {
    %c0_i32 = arith.constant 0 : i32
    %c0_i32_0 = arith.constant 0 : i32
    return %arg0, %c0_i32 : i32, i32
  }
}

</mosaic_0001>

<bundles_post_ra>
// kernel: autoencoder_forward.1
= control target key start
LH: loop header
LB: loop body
LE: loop exit
PB: predicated region body
PF: predicated region fallthrough
CT: control target
= control target key end

     0   :  { %s3007_s0 = inlined_call_operand.vmem [shape: f32[8,784], index: 0, kind: input, shape index: {}]   ;;  %s3008_s1 = inlined_call_operand.vmem [shape: bf16[784,128], index: 1, kind: input, shape index: {}]   ;;  %s3009_s2 = inlined_call_operand.vmem [shape: f32[1,128], index: 2, kind: input, shape index: {}]   ;;  %s3010_s3 = inlined_call_operand.vmem [shape: bf16[128,64], index: 3, kind: input, shape index: {}]   ;;  %s3011_s4 = inlined_call_operand.vmem [shape: f32[1,64], index: 4, kind: input, shape index: {}]   ;;  %s3012_s5 = inlined_call_operand.vmem [shape: bf16[64,12], index: 5, kind: input, shape index: {}]   ;;  %s3013_s6 = inlined_call_operand.vmem [shape: f32[1,12], index: 6, kind: input, shape index: {}]   ;;  %s3014_s7 = inlined_call_operand.vmem [shape: bf16[12,128], index: 7, kind: input, shape index: {}]   ;;  %s3015_s8 = inlined_call_operand.vmem [shape: f32[1,128], index: 8, kind: input, shape index: {}]   ;;  %s3016_s9 = inlined_call_operand.vmem [shape: bf16[128,12], index: 9, kind: input, shape index: {}]   ;;  %s3017_s10 = inlined_call_operand.vmem [shape: f32[1,12], index: 10, kind: input, shape index: {}]   ;;  %s3018_s11 = inlined_call_operand.vmem [shape: bf16[12,64], index: 11, kind: input, shape index: {}]   ;;  %s3019_s12 = inlined_call_operand.vmem [shape: f32[1,64], index: 12, kind: input, shape index: {}]   ;;  %s3020_s13 = inlined_call_operand.vmem [shape: bf16[64,128], index: 13, kind: input, shape index: {}]   ;;  %s3021_s14 = inlined_call_operand.vmem [shape: f32[1,128], index: 14, kind: input, shape index: {}]   ;;  %s3022_s15 = inlined_call_operand.vmem [shape: bf16[128,784], index: 15, kind: input, shape index: {}]   ;;  %s3023_s16 = inlined_call_operand.vmem [shape: f32[1,784], index: 16, kind: input, shape index: {}]   ;;  %s3024_s17 = inlined_call_operand.vmem [shape: bf16[8,128], index: 17, kind: output, shape index: {0}]   ;;  %s3025_s18 = inlined_call_operand.hbm [shape: bf16[8,784], index: 18, kind: output, shape index: {1}]  }
   0x1   :  { %3028 = sst [smem:[#allocation5_spill]] %s3007_s0 }
   0x2   :  { %3029 = sst [smem:[#allocation6_spill]] %s3008_s1 }
   0x3   :  { %3030 = sst [smem:[#allocation7_spill]] %s3009_s2 }
   0x4   :  { %s3031_s29 = sld [smem:[#allocation6_spill]]  ;;  %s3032_s22 = sld [smem:[#allocation5_spill]]  ;;  %v2398_v44 = vmov 0.0   ;;  %vm2399_vm0 = vmmov 0   ;;  %vm473_vm1 = vcmask 130048  }
   0xa   :  { %v2179_v0 = vld [vmem:[%s3031_s29 + $0x40] sm:$0xff]   ;;  %v2183_v4 = vld [vmem:[%s3031_s29 + $0x48] sm:$0xff]   ;;  %v2187_v8 = vld [vmem:[%s3031_s29 + $0x50] sm:$0xff]  }
   0xb   :  { %v2180_v1 = vld [vmem:[%s3031_s29] sm:$0xff]   ;;  %1964 = vmatprep.subr.bf16.mxu0 %v2179_v0  ;;  %v2184_v5 = vld [vmem:[%s3031_s29 + $0x8] sm:$0xff]   ;;  %v2188_v9 = vld [vmem:[%s3031_s29 + $0x10] sm:$0xff]  }
   0xc   :  { %v2181_v2 = vld [vmem:[%s3031_s29 + $0xc0] sm:$0xff]   ;;  %1965 = vmatpush3.bf16.msra.mxu0 %v2180_v1  ;;  %v2185_v6 = vld [vmem:[%s3031_s29 + $0xc8] sm:$0xff]   ;;  %v2189_v10 = vld [vmem:[%s3031_s29 + $0xd0] sm:$0xff]  }
   0xd   :  { %v2182_v3 = vld [vmem:[%s3031_s29 + $0x80] sm:$0xff]   ;;  %1986 = vmatprep.subr.bf16.mxu1 %v2181_v2  ;;  %1966 = vmatprep.subr.bf16.mxu0 %v2183_v4  ;;  %v2186_v7 = vld [vmem:[%s3031_s29 + $0x88] sm:$0xff]   ;;  %v2190_v11 = vld [vmem:[%s3031_s29 + $0x90] sm:$0xff]  }
   0xe   :  { %1987 = vmatpush3.bf16.msra.mxu1 %v2182_v3  ;;  %v2191_v12 = vld [vmem:[%s3031_s29 + $0x58] sm:$0xff]   ;;  %v2195_v16 = vld [vmem:[%s3031_s29 + $0x60] sm:$0xff]   ;;  %v2199_v20 = vld [vmem:[%s3031_s29 + $0x68] sm:$0xff]  }
   0xf   :  { %1988 = vmatprep.subr.bf16.mxu1 %v2185_v6  ;;  %v2192_v13 = vld [vmem:[%s3031_s29 + $0x18] sm:$0xff]   ;;  %v2196_v17 = vld [vmem:[%s3031_s29 + $0x20] sm:$0xff]   ;;  %v2200_v21 = vld [vmem:[%s3031_s29 + $0x28] sm:$0xff]  }
  0x10   :  { %1967 = vmatpush3.bf16.msra.mxu0 %v2184_v5  ;;  %v2193_v14 = vld [vmem:[%s3031_s29 + $0xd8] sm:$0xff]   ;;  %v2197_v18 = vld [vmem:[%s3031_s29 + $0xe0] sm:$0xff]   ;;  %v2201_v22 = vld [vmem:[%s3031_s29 + $0xe8] sm:$0xff]  }
  0x11   :  { %1968 = vmatprep.subr.bf16.mxu0 %v2187_v8  ;;  %v2194_v15 = vld [vmem:[%s3031_s29 + $0x98] sm:$0xff]   ;;  %v2198_v19 = vld [vmem:[%s3031_s29 + $0xa0] sm:$0xff]   ;;  %v2202_v23 = vld [vmem:[%s3031_s29 + $0xa8] sm:$0xff]  }
  0x12   :  { %1989 = vmatpush3.bf16.msra.mxu1 %v2186_v7  ;;  %v2203_v24 = vld [vmem:[%s3031_s29 + $0x70] sm:$0xff]   ;;  %v2207_v28 = vld [vmem:[%s3031_s29 + $0x78] sm:$0xff]   ;;  %v61_v31 = vld [vmem:[%s3032_s22 + $0x8] sm:$0xff] }
  0x13   :  { %1990 = vmatprep.subr.bf16.mxu1 %v2189_v10  ;;  %v2204_v25 = vld [vmem:[%s3031_s29 + $0x30] sm:$0xff]   ;;  %v2208_v29 = vld [vmem:[%s3031_s29 + $0x38] sm:$0xff]   ;;  %v68_v32 = vpack.c.bf16 %v61_v31, %v61_v31  ;;  %v60_v34 = vld [vmem:[%s3032_s22] sm:$0xff] }
  0x14   :  { %1969 = vmatpush3.bf16.msra.mxu0 %v2188_v9  ;;  %v2205_v26 = vld [vmem:[%s3031_s29 + $0xf0] sm:$0xff]   ;;  %v2209_v30 = vld [vmem:[%s3031_s29 + $0xf8] sm:$0xff]   ;;  %v67_v35 = vpack.c.bf16 %v60_v34, %v60_v34  ;;  %v2211_v36 = vld [vmem:[%s3031_s29 + $0x140] sm:$0xff]  }
  0x15   :  { %1970 = vmatprep.subr.bf16.mxu0 %v2191_v12  ;;  %v2206_v27 = vld [vmem:[%s3031_s29 + $0xb0] sm:$0xff]   ;;  %v2210_v33 = vld [vmem:[%s3031_s29 + $0xb8] sm:$0xff]   ;;  %509 = vmatprep.mubr.bf16.mxu0 %v68_v32  ;;  %v2212_v39 = vld [vmem:[%s3031_s29 + $0x100] sm:$0xff]  }
  0x16   :  { %1991 = vmatpush3.bf16.msra.mxu1 %v2190_v11  ;;  %v63_v37 = vld [vmem:[%s3032_s22 + $0x18] sm:$0xff]  ;;  %v62_v40 = vld [vmem:[%s3032_s22 + $0x10] sm:$0xff]  ;;  %v2213_v42 = vld [vmem:[%s3031_s29 + $0x148] sm:$0xff]  }
  0x17   :  { %1992 = vmatprep.subr.bf16.mxu1 %v2193_v14  ;;  %v70_v38 = vpack.c.bf16 %v63_v37, %v63_v37  ;;  %v69_v41 = vpack.c.bf16 %v62_v40, %v62_v40  ;;  %v2214_v43 = vld [vmem:[%s3031_s29 + $0x108] sm:$0xff]   ;;  %v2215_v45 = vld [vmem:[%s3031_s29 + $0x150] sm:$0xff]   ;;  %v2217_v47 = vld [vmem:[%s3031_s29 + $0x158] sm:$0xff]  }
  0x18   :  { %1971 = vmatpush3.bf16.msra.mxu0 %v2192_v13  ;;  %v2216_v46 = vld [vmem:[%s3031_s29 + $0x110] sm:$0xff]   ;;  %v2218_v48 = vld [vmem:[%s3031_s29 + $0x118] sm:$0xff]   ;;  %v2219_v49 = vld [vmem:[%s3031_s29 + $0x160] sm:$0xff]  }
  0x19   :  { %1972 = vmatprep.subr.bf16.mxu0 %v2195_v16  ;;  %549 = vmatprep.mubr.bf16.mxu1 %v70_v38  ;;  %v2220_v50 = vld [vmem:[%s3031_s29 + $0x120] sm:$0xff]   ;;  %v2221_v51 = vld [vmem:[%s3031_s29 + $0x168] sm:$0xff]   ;;  %v2223_v55 = vld [vmem:[%s3031_s29 + $0x170] sm:$0xff]  }
  0x1a   :  { %1993 = vmatpush3.bf16.msra.mxu1 %v2194_v15  ;;  %v2222_v52 = vld [vmem:[%s3031_s29 + $0x128] sm:$0xff]   ;;  %v2227_v53 = vld [vmem:[%s3031_s29 + $0x180] sm:$0xff]   ;;  %v66_v57 = vld [vmem:[%s3032_s22 + $0x30] sm:$0xff] }
  0x1b   :  { %1994 = vmatprep.subr.bf16.mxu1 %v2197_v18  ;;  %v65_v54 = vld [vmem:[%s3032_s22 + $0x28] sm:$0xff]  ;;  %v73_v58 = vpack.c.bf16 %v66_v57, %v66_v57  ;;  %v2224_v59 = vld [vmem:[%s3031_s29 + $0x130] sm:$0xff]   ;;  %v2225_v60 = vld [vmem:[%s3031_s29 + $0x178] sm:$0xff]  }
  0x1c   :  { %1973 = vmatpush3.bf16.msra.mxu0 %v2196_v17  ;;  %v72_v56 = vpack.c.bf16 %v65_v54, %v65_v54  ;;  %v2226_v61 = vld [vmem:[%s3031_s29 + $0x138] sm:$0xff]   ;;  %v64_v62 = vld [vmem:[%s3032_s22 + $0x20] sm:$0xff] }
  0x1d   :  { %1974 = vmatprep.subr.bf16.mxu0 %v2199_v20  ;;  %v71_v63 = vpack.c.bf16 %v64_v62, %v64_v62 }
  0x1e   :  { %1995 = vmatpush3.bf16.msra.mxu1 %v2198_v19 }
  0x1f   :  { %1996 = vmatprep.subr.bf16.mxu1 %v2201_v22 }
  0x20   :  { %1975 = vmatpush3.bf16.msra.mxu0 %v2200_v21 }
  0x21   :  { %1976 = vmatprep.subr.bf16.mxu0 %v2203_v24 }
  0x22   :  { %1997 = vmatpush3.bf16.msra.mxu1 %v2202_v23 }
  0x23   :  { %1998 = vmatprep.subr.bf16.mxu1 %v2205_v26 }
  0x24   :  { %1977 = vmatpush3.bf16.msra.mxu0 %v2204_v25 }
  0x25   :  { %1978 = vmatprep.subr.bf16.mxu0 %v2207_v28 }
  0x26   :  { %1999 = vmatpush3.bf16.msra.mxu1 %v2206_v27 }
  0x27   :  { %2000 = vmatprep.subr.bf16.mxu1 %v2209_v30 }
  0x28   :  { %1979 = vmatpush3.bf16.msra.mxu0 %v2208_v29 }
  0x29   :  { %2008 = vmatprep.subr.bf16.mxu0 %v2211_v36 }
  0x2a   :  { %2001 = vmatpush3.bf16.msra.mxu1 %v2210_v33 }
  0x2b   :  { %510 = vmatmul.mubr.bf16.vlgmr.msra.gmra.mrb[0].mxu0 %v67_v35  ;;  %2073 = vmatprep.subr.bf16.mxu1 %v2398_v44 }
  0x2c   :  { %2009 = vmatpush3.bf16.msra.mxu0 %v2212_v39  ;;  %589 = vmatprep.mubr.bf16.mxu0 %v72_v56 }
  0x2d   :  { %550 = vmatmul.mubr.bf16.vlgmr.msra.gmra.mrb[0].mxu1 %v69_v41  ;;  %2010 = vmatprep.subr.bf16.mxu0 %v2213_v42 }
  0x2e   :  { %2075 = vmatprep.mubr.msk.bf16.mxu1 %vm2399_vm0, %v2398_v44  ;;  %2074 = vmatpush3.bf16.msra.mxu1 %v2227_v53 }
  0x2f   :  { %2079 = vmatprep.subr.bf16.mxu1 %v2398_v44 }
  0x30   :  { %2011 = vmatpush3.bf16.msra.mxu0 %v2214_v43 }
  0x31   :  { %2012 = vmatprep.subr.bf16.mxu0 %v2215_v45 }
  0x34   :  { %2013 = vmatpush3.bf16.msra.mxu0 %v2216_v46 }
  0x35   :  { %2014 = vmatprep.subr.bf16.mxu0 %v2217_v47  ;;  %2076 = vmatmul.mubr.msk.bf16.vlgmr.msra.gmra.mrb[4].mxu1 %vm473_vm1, %v73_v58 }
  0x36   :  { %2095 = vmatprep.mubr.msk.bf16.mxu1 %vm2399_vm0, %v2398_v44 }
  0x38   :  { %2015 = vmatpush3.bf16.msra.mxu0 %v2218_v48 }
  0x39   :  { %2016 = vmatprep.subr.bf16.mxu0 %v2219_v49 }
  0x3c   :  { %2017 = vmatpush3.bf16.msra.mxu0 %v2220_v50 }
  0x3d   :  { %2018 = vmatprep.subr.bf16.mxu0 %v2221_v51 }
  0x40   :  { %2019 = vmatpush3.bf16.msra.mxu0 %v2222_v52 }
  0x41   :  { %2020 = vmatprep.subr.bf16.mxu0 %v2223_v55 }
  0x44   :  { %2021 = vmatpush3.bf16.msra.mxu0 %v2224_v59 }
  0x45   :  { %2022 = vmatprep.subr.bf16.mxu0 %v2225_v60 }
  0x48   :  { %2023 = vmatpush3.bf16.msra.mxu0 %v2226_v61 }
  0x49   :  { %2099 = vmatprep.subr.bf16.mxu0 %v2398_v44 }
  0x4b   :  { %590 = vmatmul.mubr.bf16.vlgmr.msra.gmra.mrb[4].mxu0 %v71_v63 }
  0x4c   :  { %2107 = vmatprep.mubr.msk.bf16.mxu0 %vm2399_vm0, %v2398_v44 }
  0x4d   :  { %24 = vsyncpa [#allocation3], 0  ;;  %v2228_v0 = vld [vmem:[%s3010_s3] sm:$0xff]   ;;  %v2229_v1 = vld [vmem:[%s3010_s3 + $0x8] sm:$0xff]   ;;  %s3033_s20 = sld [smem:[#allocation7_spill]]  ;;  %vm791_vm2 = vcmask 523264  }
  0x4e   :  { %2080 = vmatpush3.bf16.msra.mxu1 %v2228_v0  ;;  %v2230_v2 = vld [vmem:[%s3010_s3 + $0x10] sm:$0xff]   ;;  %v2231_v3 = vld [vmem:[%s3010_s3 + $0x18] sm:$0xff]   ;;  %v2232_v4 = vld [vmem:[%s3010_s3 + $0x20] sm:$0xff]   ;;  %vm855_vm3 = vcmask 1045504   ;;  %vm851_vm4 = vcmask 97280   ;;  %vm1786_vm5 = vcmask 125952  }
  0x4f   :  { %2081 = vmatprep.subr.bf16.mxu1 %v2398_v44  ;;  %v2233_v5 = vld [vmem:[%s3010_s3 + $0x28] sm:$0xff]   ;;  %v2234_v6 = vld [vmem:[%s3010_s3 + $0x30] sm:$0xff]   ;;  %v2235_v7 = vld [vmem:[%s3010_s3 + $0x38] sm:$0xff]  }
  0x50   :  { %v2236_v34 = vld [vmem:[%s3012_s5] sm:$0xff]   ;;  %v2237_v35 = vld [vmem:[%s3012_s5 + $0x8] sm:$0xff]   ;;  %v2238_v36 = vld [vmem:[%s3012_s5 + $0x10] sm:$0xff]  }
  0x51   :  { %2100 = vmatpush3.bf16.msra.mxu0 %v2236_v34  ;;  %v2239_v37 = vld [vmem:[%s3012_s5 + $0x18] sm:$0xff]   ;;  %v1857_v38 = vld [vmem:[%s3011_s4] ss:$0 sm:$0xff]  ;;  %v2242_v50 = vld [vmem:[%s3016_s9 + $0x8] sm:$0xff]  }
  0x52   :  { %2082 = vmatpush3.bf16.msra.mxu1 %v2229_v1  ;;  %2101 = vmatprep.subr.bf16.mxu0 %v2398_v44  ;;  %v2240_v47 = vld [vmem:[%s3014_s7] sm:$0x3f]   ;;  %v2243_v51 = vld [vmem:[%s3016_s9 + $0x10] sm:$0xff]   ;;  %v2244_v52 = vld [vmem:[%s3016_s9 + $0x18] sm:$0xff]  }
  0x53   :  { %2083 = vmatprep.subr.bf16.mxu1 %v2398_v44  ;;  %v1806_v9 = vld [vmem:[%s3033_s20] ss:$0 sm:$0xff]  ;;  %v857_v48 = vsel %vm855_vm3, %v2240_v47, 0  ;;  %v2246_v54 = vld [vmem:[%s3016_s9 + $0x28] sm:$0xff]   ;;  %v2247_v55 = vld [vmem:[%s3016_s9 + $0x30] sm:$0xff]  }
  0x54   :  { %v2241_v49 = vld [vmem:[%s3016_s9] sm:$0xff]   ;;  %v2248_v0 = vld [vmem:[%s3016_s9 + $0x38] sm:$0xff]   ;;  %v2274_v47 = vld [vmem:[%s3022_s15 + $0xac] ss:$28 sps:$4 sm:$0xff]  }
  0x55   :  { %2102 = vmatpush3.bf16.msra.mxu0 %v2237_v35  ;;  %v2245_v53 = vld [vmem:[%s3016_s9 + $0x20] sm:$0xff]  }
  0x56   :  { %2084 = vmatpush3.bf16.msra.mxu1 %v2230_v2  ;;  %2103 = vmatprep.subr.bf16.mxu0 %v2398_v44  ;;  %v1866_v56 = vld [vmem:[%s3013_s6] ss:$0 sm:$0xff] }
  0x57   :  { %2085 = vmatprep.subr.bf16.mxu1 %v2398_v44  ;;  %v1872_v1 = vld [vmem:[%s3015_s8] ss:$0 sm:$0xff] }
  0x59   :  { %2104 = vmatpush3.bf16.msra.mxu0 %v2238_v36 }
  0x5a   :  { %2086 = vmatpush3.bf16.msra.mxu1 %v2231_v3  ;;  %2105 = vmatprep.subr.bf16.mxu0 %v2398_v44 }
  0x5b   :  { %2087 = vmatprep.subr.bf16.mxu1 %v2398_v44 }
  0x5d   :  { %2106 = vmatpush3.bf16.msra.mxu0 %v2239_v37 }
  0x5e   :  { %2088 = vmatpush3.bf16.msra.mxu1 %v2232_v4  ;;  %2117 = vmatprep.subr.bf16.mxu0 %v2398_v44 }
  0x5f   :  { %2089 = vmatprep.subr.bf16.mxu1 %v2398_v44 }
  0x62   :  { %2090 = vmatpush3.bf16.msra.mxu1 %v2233_v5 }
  0x63   :  { %2091 = vmatprep.subr.bf16.mxu1 %v2398_v44 }
  0x66   :  { %2092 = vmatpush3.bf16.msra.mxu1 %v2234_v6 }
  0x67   :  { %2093 = vmatprep.subr.bf16.mxu1 %v2398_v44 }
  0x6a   :  { %2094 = vmatpush3.bf16.msra.mxu1 %v2235_v7 }
  0x6b   :  { %2111 = vmatprep.subr.bf16.mxu1 %v2398_v44 }
  0xfe   :  { %v1980_v8 = vpop.f32.mrb[0].mxu0 }
  0xff   :  { %v1981_v10 = vpop.f32.mrb[1].mxu0 }
 0x100   :  { %v1982_v11 = vadd.f32 %v1981_v10, %v1980_v8  ;;  %v1983_v12 = vpop.f32.mrb[2].mxu0  ;;  %v2002_v13 = vpop.f32.mrb[0].mxu1  ;;  %v2249_v8 = vld [vmem:[%s3018_s11] sm:$0x3f]  }
 0x101   :  { %v1984_v14 = vpop.f32.mrb[3].mxu0  ;;  %v2003_v16 = vpop.f32.mrb[1].mxu1  ;;  %v1875_v10 = vld [vmem:[%s3017_s10] ss:$0 sm:$0xff] }
 0x102   :  { %v512_v15 = vadd.f32 %v1982_v11, %v1806_v9  ;;  %v2004_v17 = vadd.f32 %v2003_v16, %v2002_v13  ;;  %v2005_v18 = vpop.f32.mrb[2].mxu1  ;;  %v1032_v9 = vsel %vm855_vm3, %v2249_v8, 0  ;;  %v2302_v8 = vld [vmem:[%s3022_s15 + $0x10] ss:$28 sps:$4 sm:$0xff]  }
 0x103   :  { %v2006_v19 = vpop.f32.mrb[3].mxu1  ;;  %v2250_v18 = vld [vmem:[%s3020_s13] sm:$0xff]  }
 0x104   :  { %v552_v20 = vadd.f32 %v2004_v17, %v512_v15  ;;  %v2251_v19 = vld [vmem:[%s3020_s13 + $0x8] sm:$0xff]  }
 0x108   :  { %v631_v21 = vpop.f32.mrb[4].mxu1 }
 0x109   :  { %v2077_v22 = vpop.f32.mrb[5].mxu1 }
 0x10a   :  { %v634_v23 = vpop.f32.mrb[6].mxu1  ;;  %v2256_v22 = vld [vmem:[%s3022_s15 + $0x4] ss:$28 sps:$4 sm:$0xff]  }
 0x10b   :  { %v2078_v24 = vpop.f32.mrb[7].mxu1  ;;  %v2257_v23 = vld [vmem:[%s3022_s15 + $0x8] ss:$28 sps:$4 sm:$0xff]  }
 0x10c   :  { %v2259_v24 = vld [vmem:[%s3022_s15 + $0xc] ss:$28 sps:$4 sm:$0xff]  }
 0x11e   :  { %v2024_v25 = vpop.f32.mrb[4].mxu0 }
 0x11f   :  { %v2025_v26 = vpop.f32.mrb[5].mxu0 }
 0x120   :  { %v2026_v27 = vadd.f32 %v2025_v26, %v2024_v25  ;;  %v2027_v28 = vpop.f32.mrb[6].mxu0  ;;  %v2265_v25 = vld [vmem:[%s3022_s15 + $0x44] ss:$28 sps:$4 sm:$0xff]  }
 0x121   :  { %v2028_v29 = vpop.f32.mrb[7].mxu0  ;;  %v2263_v26 = vld [vmem:[%s3022_s15 + $0x40] ss:$28 sps:$4 sm:$0xff]   ;;  %v2269_v28 = vld [vmem:[%s3022_s15 + $0x78] ss:$28 sps:$4 sm:$0xff]  }
 0x122   :  { %v592_v30 = vadd.f32 %v2026_v27, %v552_v20  ;;  %v2252_v20 = vld [vmem:[%s3020_s13 + $0x10] sm:$0xff]   ;;  %v2271_v27 = vld [vmem:[%s3022_s15 + $0x7c] ss:$28 sps:$4 sm:$0xff]  }
 0x123   :  { %v2277_v29 = vld [vmem:[%s3022_s15 + $0xb4] ss:$28 sps:$4 sm:$0xff]  }
 0x124   :  { %v632_v31 = vadd.f32 %v631_v21, %v592_v30  ;;  %v2253_v21 = vld [vmem:[%s3020_s13 + $0x18] sm:$0xff]   ;;  %v2275_v30 = vld [vmem:[%s3022_s15 + $0xb0] ss:$28 sps:$4 sm:$0xff]  }
 0x126   :  { %2334 = vtanh.f32 %v632_v31  ;;  %v2283_v31 = vld [vmem:[%s3022_s15 + $0xec] ss:$28 sps:$4 sm:$0xff]  }
 0x130   :  { %v2335_v32 = vpop.eup %2334 }
 0x131   :  { %v638_v33 = vpack.c.bf16 %v2335_v32, %v2335_v32  ;;  %v2281_v32 = vld [vmem:[%s3022_s15 + $0xe8] ss:$28 sps:$4 sm:$0xff]  }
 0x133   :  { %2096 = vmatmul.mubr.bf16.vlgmr.msra.gmra.mrb[8].mxu1 %v638_v33  ;;  %v1884_v33 = vld [vmem:[%s3019_s12] ss:$0 sm:$0xff] }
 0x134   :  { %2113 = vmatprep.mubr.msk.bf16.mxu1 %vm2399_vm0, %v2398_v44  ;;  %2112 = vmatpush3.bf16.msra.mxu1 %v857_v48  ;;  %v2272_v48 = vld [vmem:[%s3022_s15 + $0xa8] ss:$28 sps:$4 sm:$0xff]  }
 0x135   :  { %2137 = vmatprep.subr.bf16.mxu1 %v2398_v44 }
 0x206   :  { %v744_v39 = vpop.f32.mrb[8].mxu1 }
 0x207   :  { %v745_v40 = vadd.f32 %v1857_v38, %v744_v39  ;;  %v2097_v41 = vpop.f32.mrb[9].mxu1 }
 0x208   :  { %v747_v42 = vpop.f32.mrb[10].mxu1 }
 0x209   :  { %2336 = vtanh.f32 %v745_v40  ;;  %v2098_v43 = vpop.f32.mrb[11].mxu1  ;;  %v2254_v40 = vld [vmem:[%s3022_s15] ss:$28 sps:$4 sm:$0xff]  }
 0x20a   :  { %v2262_v42 = vld [vmem:[%s3022_s15 + $0x3c] ss:$28 sps:$4 sm:$0xff]  }
 0x20b   :  { %v2260_v43 = vld [vmem:[%s3022_s15 + $0x38] ss:$28 sps:$4 sm:$0xff]  }
 0x213   :  { %v2337_v45 = vpop.eup %2336 }
 0x214   :  { %v751_v46 = vpack.c.bf16 %v2337_v45, %v2337_v45  ;;  %v2268_v45 = vld [vmem:[%s3022_s15 + $0x74] ss:$28 sps:$4 sm:$0xff]  }
 0x216   :  { %2108 = vmatmul.mubr.msk.bf16.vlgmr.msra.gmra.mrb[8].mxu0 %vm791_vm2, %v751_v46  ;;  %v2266_v46 = vld [vmem:[%s3022_s15 + $0x70] ss:$28 sps:$4 sm:$0xff]  }
 0x217   :  { %2133 = vmatprep.mubr.msk.bf16.mxu0 %vm2399_vm0, %v2398_v44  ;;  %2118 = vmatpush3.bf16.msra.mxu0 %v2241_v49  ;;  %v2280_v49 = vld [vmem:[%s3022_s15 + $0xe4] ss:$28 sps:$4 sm:$0xff]  }
 0x218   :  { %2119 = vmatprep.subr.bf16.mxu0 %v2398_v44 }
 0x21b   :  { %2120 = vmatpush3.bf16.msra.mxu0 %v2242_v50  ;;  %v2278_v50 = vld [vmem:[%s3022_s15 + $0xe0] ss:$28 sps:$4 sm:$0xff]  }
 0x21c   :  { %2121 = vmatprep.subr.bf16.mxu0 %v2398_v44 }
 0x21f   :  { %2122 = vmatpush3.bf16.msra.mxu0 %v2243_v51  ;;  %v2286_v51 = vld [vmem:[%s3022_s15 + $0x11c] ss:$28 sps:$4 sm:$0xff]  }
 0x220   :  { %2123 = vmatprep.subr.bf16.mxu0 %v2398_v44 }
 0x223   :  { %2124 = vmatpush3.bf16.msra.mxu0 %v2244_v52  ;;  %v2289_v52 = vld [vmem:[%s3022_s15 + $0x124] ss:$28 sps:$4 sm:$0xff]  }
 0x224   :  { %2125 = vmatprep.subr.bf16.mxu0 %v2398_v44 }
 0x227   :  { %2126 = vmatpush3.bf16.msra.mxu0 %v2245_v53  ;;  %v2284_v53 = vld [vmem:[%s3022_s15 + $0x118] ss:$28 sps:$4 sm:$0xff]  }
 0x228   :  { %2127 = vmatprep.subr.bf16.mxu0 %v2398_v44 }
 0x22b   :  { %2128 = vmatpush3.bf16.msra.mxu0 %v2246_v54  ;;  %v2287_v54 = vld [vmem:[%s3022_s15 + $0x120] ss:$28 sps:$4 sm:$0xff]  }
 0x22c   :  { %2129 = vmatprep.subr.bf16.mxu0 %v2398_v44 }
 0x22f   :  { %2130 = vmatpush3.bf16.msra.mxu0 %v2247_v55  ;;  %v2292_v55 = vld [vmem:[%s3022_s15 + $0x154] ss:$28 sps:$4 sm:$0xff]  }
 0x230   :  { %2131 = vmatprep.subr.bf16.mxu0 %v2398_v44 }
 0x233   :  { %2132 = vmatpush3.bf16.msra.mxu0 %v2248_v0  ;;  %v2400_v0 = vmov 0  }
 0x234   :  { %1590 = vmatprep.subr.bf16.mxu0 %v2259_v24  ;;  %v2322_v24 = vld [vmem:[%s3022_s15 + $0x128] ss:$28 sps:$4 sm:$0xff]  }
 0x2e9   :  { %v829_v57 = vpop.f32.mrb[8].mxu0 }
 0x2ea   :  { %v830_v58 = vadd.f32 %v1866_v56, %v829_v57  ;;  %v2109_v59 = vpop.f32.mrb[9].mxu0  ;;  %v2295_v56 = vld [vmem:[%s3022_s15 + $0x15c] ss:$28 sps:$4 sm:$0xff]   ;;  %v2290_v57 = vld [vmem:[%s3022_s15 + $0x150] ss:$28 sps:$4 sm:$0xff]  }
 0x2eb   :  { %v832_v60 = vpop.f32.mrb[10].mxu0  ;;  %v2298_v59 = vld [vmem:[%s3022_s15 + $0x18c] ss:$28 sps:$4 sm:$0xff]  }
 0x2ec   :  { %2338 = vtanh.f32 %v830_v58  ;;  %v2110_v61 = vpop.f32.mrb[11].mxu0  ;;  %v2293_v58 = vld [vmem:[%s3022_s15 + $0x158] ss:$28 sps:$4 sm:$0xff]  }
 0x2ed   :  { %v2301_v60 = vld [vmem:[%s3022_s15 + $0x194] ss:$28 sps:$4 sm:$0xff]   ;;  %v2296_v61 = vld [vmem:[%s3022_s15 + $0x188] ss:$28 sps:$4 sm:$0xff]  }
 0x2f6   :  { %v2339_v62 = vpop.eup %2338 }
 0x2f7   :  { %v836_v63 = vpack.c.bf16 %v2339_v62, %v2339_v62  ;;  %v2299_v62 = vld [vmem:[%s3022_s15 + $0x190] ss:$28 sps:$4 sm:$0xff]  }
 0x2f9   :  { %2114 = vmatmul.mubr.msk.bf16.vlgmr.msra.gmra.mrb[12].mxu1 %vm851_vm4, %v836_v63  ;;  %v2304_v63 = vld [vmem:[%s3022_s15 + $0x14] ss:$28 sps:$4 sm:$0xff]  }
 0x2fa   :  { %2139 = vmatprep.mubr.msk.bf16.mxu1 %vm2399_vm0, %v2398_v44  ;;  %2138 = vmatpush3.bf16.msra.mxu1 %v1032_v9  ;;  %v2305_v9 = vld [vmem:[%s3022_s15 + $0x18] ss:$28 sps:$4 sm:$0xff]  }
 0x2fb   :  { %2143 = vmatprep.subr.bf16.mxu1 %v2398_v44 }
 0x3cc   :  { %v893_v2 = vpop.f32.mrb[12].mxu1 }
 0x3cd   :  { %v894_v3 = vadd.f32 %v1872_v1, %v893_v2  ;;  %v2115_v4 = vpop.f32.mrb[13].mxu1  ;;  %v1887_v1 = vld [vmem:[%s3021_s14] ss:$0 sm:$0xff] }
 0x3ce   :  { %v896_v5 = vpop.f32.mrb[14].mxu1 }
 0x3cf   :  { %v899_v6 = vpack.c.bf16 %v894_v3, %v894_v3  ;;  %v2116_v7 = vpop.f32.mrb[15].mxu1 }
 0x3d1   :  { %900 = vst [vmem:[%s3024_s17] sm:$0xf] %v899_v6  ;;  %2134 = vmatmul.mubr.bf16.vlgmr.msra.gmra.mrb[12].mxu0 %v899_v6 }
 0x3d2   :  { %1591 = vmatpush1.bf16.msra.mxu0 %v2257_v23  ;;  %1622 = vmatprep.mubr.bf16.mxu0 %v2400_v0  ;;  %v2324_v23 = vld [vmem:[%s3022_s15 + $0x12c] ss:$28 sps:$4 sm:$0xff]  }
 0x3d3   :  { %1592 = vmatprep.subr.bf16.mxu0 %v2265_v25  ;;  %v2325_v25 = vld [vmem:[%s3022_s15 + $0x130] ss:$28 sps:$4 sm:$0xff]  }
 0x3d6   :  { %1593 = vmatpush1.bf16.msra.mxu0 %v2263_v26  ;;  %v2328_v26 = vld [vmem:[%s3022_s15 + $0x164] ss:$28 sps:$4 sm:$0xff]  }
 0x3d7   :  { %1594 = vmatprep.subr.bf16.mxu0 %v2271_v27  ;;  %v2326_v27 = vld [vmem:[%s3022_s15 + $0x160] ss:$28 sps:$4 sm:$0xff]  }
 0x3da   :  { %1595 = vmatpush1.bf16.msra.mxu0 %v2269_v28  ;;  %v2329_v28 = vld [vmem:[%s3022_s15 + $0x168] ss:$28 sps:$4 sm:$0xff]  }
 0x3db   :  { %1596 = vmatprep.subr.bf16.mxu0 %v2277_v29  ;;  %v2332_v29 = vld [vmem:[%s3022_s15 + $0x19c] ss:$28 sps:$4 sm:$0xff]  }
 0x3de   :  { %1597 = vmatpush1.bf16.msra.mxu0 %v2275_v30  ;;  %v2330_v30 = vld [vmem:[%s3022_s15 + $0x198] ss:$28 sps:$4 sm:$0xff]  }
 0x3df   :  { %1598 = vmatprep.subr.bf16.mxu0 %v2283_v31  ;;  %v2333_v31 = vld [vmem:[%s3022_s15 + $0x1a0] ss:$28 sps:$4 sm:$0xff]  }
 0x3e2   :  { %1599 = vmatpush1.bf16.msra.mxu0 %v2281_v32  ;;  %v1226_v32 = vlaneseq }
 0x3e3   :  { %1600 = vmatprep.subr.bf16.mxu0 %v2289_v52 }
 0x3e6   :  { %1601 = vmatpush1.bf16.msra.mxu0 %v2287_v54 }
 0x3e7   :  { %1602 = vmatprep.subr.bf16.mxu0 %v2295_v56 }
 0x3ea   :  { %1603 = vmatpush1.bf16.msra.mxu0 %v2293_v58 }
 0x3eb   :  { %1604 = vmatprep.subr.bf16.mxu0 %v2301_v60 }
 0x3ee   :  { %1605 = vmatpush1.bf16.msra.mxu0 %v2299_v62 }
 0x3ef   :  { %2155 = vmatprep.subr.bf16.mxu0 %v2398_v44 }
 0x4a4   :  { %v1006_v11 = vpop.f32.mrb[12].mxu0 }
 0x4a5   :  { %v1007_v12 = vadd.f32 %v1875_v10, %v1006_v11  ;;  %v2135_v13 = vpop.f32.mrb[13].mxu0  ;;  %v2308_v11 = vld [vmem:[%s3022_s15 + $0x4c] ss:$28 sps:$4 sm:$0xff]  }
 0x4a6   :  { %v1009_v14 = vpop.f32.mrb[14].mxu0  ;;  %v2309_v13 = vld [vmem:[%s3022_s15 + $0x50] ss:$28 sps:$4 sm:$0xff]  }
 0x4a7   :  { %2340 = vtanh.f32 %v1007_v12  ;;  %v2136_v15 = vpop.f32.mrb[15].mxu0  ;;  %v2306_v12 = vld [vmem:[%s3022_s15 + $0x48] ss:$28 sps:$4 sm:$0xff]  }
 0x4a8   :  { %v2312_v14 = vld [vmem:[%s3022_s15 + $0x84] ss:$28 sps:$4 sm:$0xff]  }
 0x4a9   :  { %v2310_v15 = vld [vmem:[%s3022_s15 + $0x80] ss:$28 sps:$4 sm:$0xff]  }
 0x4b1   :  { %v2341_v16 = vpop.eup %2340 }
 0x4b2   :  { %v1013_v17 = vpack.c.bf16 %v2341_v16, %v2341_v16  ;;  %v2313_v16 = vld [vmem:[%s3022_s15 + $0x88] ss:$28 sps:$4 sm:$0xff]  }
 0x4b4   :  { %2140 = vmatmul.mubr.msk.bf16.vlgmr.msra.gmra.mrb[16].mxu1 %vm851_vm4, %v1013_v17  ;;  %v2316_v17 = vld [vmem:[%s3022_s15 + $0xbc] ss:$28 sps:$4 sm:$0xff]  }
 0x4b5   :  { %2151 = vmatprep.mubr.msk.bf16.mxu1 %vm2399_vm0, %v2398_v44  ;;  %2144 = vmatpush3.bf16.msra.mxu1 %v2250_v18  ;;  %v2314_v18 = vld [vmem:[%s3022_s15 + $0xb8] ss:$28 sps:$4 sm:$0xff]  }
 0x4b6   :  { %2145 = vmatprep.subr.bf16.mxu1 %v2398_v44 }
 0x4b9   :  { %2146 = vmatpush3.bf16.msra.mxu1 %v2251_v19  ;;  %v2317_v19 = vld [vmem:[%s3022_s15 + $0xc0] ss:$28 sps:$4 sm:$0xff]  }
 0x4ba   :  { %2147 = vmatprep.subr.bf16.mxu1 %v2398_v44 }
 0x4bd   :  { %2148 = vmatpush3.bf16.msra.mxu1 %v2252_v20  ;;  %v2320_v20 = vld [vmem:[%s3022_s15 + $0xf4] ss:$28 sps:$4 sm:$0xff]  }
 0x4be   :  { %2149 = vmatprep.subr.bf16.mxu1 %v2398_v44 }
 0x4c1   :  { %2150 = vmatpush3.bf16.msra.mxu1 %v2253_v21  ;;  %v2318_v21 = vld [vmem:[%s3022_s15 + $0xf0] ss:$28 sps:$4 sm:$0xff]  }
 0x4c2   :  { %1549 = vmatprep.subr.bf16.mxu1 %v2256_v22  ;;  %v2321_v22 = vld [vmem:[%s3022_s15 + $0xf8] ss:$28 sps:$4 sm:$0xff]   ;;  %s2401_s15 = smov [#allocation2]  }
 0x587   :  { %v1068_v34 = vpop.f32.mrb[16].mxu1 }
 0x588   :  { %v1069_v35 = vadd.f32 %v1884_v33, %v1068_v34  ;;  %v2141_v36 = vpop.f32.mrb[17].mxu1  ;;  %v1227_v33 = vshrl.u32 %v1226_v32, 7 }
 0x589   :  { %v1071_v37 = vpop.f32.mrb[18].mxu1  ;;  %v1224_v36 = vld [vmem:[%s3023_s16] sm:$0x7f]  ;;  %s1796_s16 = sshll.u32 %s2401_s15, 4  ;;  %s1797_s16 = int_to_ptr.vmem [resolvable:$true] %s1796_s16 }
 0x58a   :  { %2342 = vtanh.f32 %v1069_v35  ;;  %v2142_v38 = vpop.f32.mrb[19].mxu1  ;;  %v1228_v34 = vsub.s32 0, %v1227_v33  ;;  %v1236_v35 = vsub.s32 2, %v1227_v33  ;;  %v1232_v37 = vsub.s32 1, %v1227_v33  ;;  %s2374_s13 = scalar_lea.vmem %s1797_s16, 448  ;;  %p2379_p1 = scmp.lt.s32.totalorder %s1797_s16, %s1797_s16 }
 0x58b   :  { %v1240_v38 = vsub.s32 3, %v1227_v33  ;;  %p2375_p0 = scmp.ne.s32.totalorder %s1797_s16, %s2374_s13  ;;  %p2380_p2 = scmp.lt.s32.totalorder %s2374_s13, %s2374_s13 }
 0x58d   :  { %p2381_p3 = por %p2380_p2, %p2379_p1 }
 0x58f   :  { %p2382_p4 = pnand %p2381_p3, %p2375_p0 }
 0x594   :  { %v2343_v39 = vpop.eup %2342 }
 0x595   :  { %v1075_v41 = vpack.c.bf16 %v2343_v39, %v2343_v39  ;;  %v1229_v39 = vrot.slane %v1224_v36, %v1228_v34 }
 0x597   :  { %2152 = vmatmul.mubr.msk.bf16.vlgmr.msra.gmra.mrb[20].mxu1 %vm791_vm2, %v1075_v41  ;;  %v1233_v41 = vrot.slane %v1224_v36, %v1232_v37 }
 0x598   :  { %1550 = vmatpush1.bf16.msra.mxu1 %v2254_v40  ;;  %1581 = vmatprep.mubr.bf16.mxu1 %v2400_v0  ;;  %v1237_v40 = vrot.slane %v1224_v36, %v1236_v35 }
 0x599   :  { %1551 = vmatprep.subr.bf16.mxu1 %v2262_v42  ;;  %v1241_v42 = vrot.slane %v1224_v36, %v1240_v38 }
 0x59c   :  { %1552 = vmatpush1.bf16.msra.mxu1 %v2260_v43 }
 0x59d   :  { %1553 = vmatprep.subr.bf16.mxu1 %v2268_v45 }
 0x5a0   :  { %1554 = vmatpush1.bf16.msra.mxu1 %v2266_v46 }
 0x5a1   :  { %1555 = vmatprep.subr.bf16.mxu1 %v2274_v47 }
 0x5a4   :  { %1556 = vmatpush1.bf16.msra.mxu1 %v2272_v48 }
 0x5a5   :  { %1557 = vmatprep.subr.bf16.mxu1 %v2280_v49 }
 0x5a8   :  { %1558 = vmatpush1.bf16.msra.mxu1 %v2278_v50 }
 0x5a9   :  { %1559 = vmatprep.subr.bf16.mxu1 %v2286_v51 }
 0x5ac   :  { %1560 = vmatpush1.bf16.msra.mxu1 %v2284_v53 }
 0x5ad   :  { %1561 = vmatprep.subr.bf16.mxu1 %v2292_v55 }
 0x5b0   :  { %1562 = vmatpush1.bf16.msra.mxu1 %v2290_v57 }
 0x5b1   :  { %1563 = vmatprep.subr.bf16.mxu1 %v2298_v59 }
 0x5b4   :  { %1564 = vmatpush1.bf16.msra.mxu1 %v2296_v61 }
 0x5b5   :  { %1631 = vmatprep.subr.bf16.mxu1 %v2304_v63 }
 0x66a   :  { %v1152_v2 = vpop.f32.mrb[20].mxu1 }
 0x66b   :  { %v1153_v3 = vadd.f32 %v1887_v1, %v1152_v2  ;;  %v2153_v4 = vpop.f32.mrb[21].mxu1 }
 0x66c   :  { %v1155_v5 = vpop.f32.mrb[22].mxu1  ;;  %v1252_v4 = vsub.s32 6, %v1227_v33 }
 0x66d   :  { %2344 = vtanh.f32 %v1153_v3  ;;  %v2154_v6 = vpop.f32.mrb[23].mxu1  ;;  %v1244_v3 = vsub.s32 4, %v1227_v33  ;;  %v1248_v5 = vsub.s32 5, %v1227_v33 }
 0x677   :  { %v2345_v7 = vpop.eup %2344 }
 0x678   :  { %v1159_v10 = vpack.c.bf16 %v2345_v7, %v2345_v7 }
 0x67a   :  { %1582 = vmatmul.mubr.bf16.vlgmr.msra.gmra.mrb[24].mxu1 %v1159_v10  ;;  %1623 = vmatmul.mubr.bf16.vlgmr.msra.gmra.mrb[16].mxu0 %v1159_v10 }
 0x67b   :  { %1632 = vmatpush1.bf16.msra.mxu1 %v2302_v8  ;;  %2156 = vmatpush3.bf16.msra.mxu0 %v2305_v9  ;;  %v1245_v8 = vrot.slane %v1224_v36, %v1244_v3  ;;  %v1253_v9 = vrot.slane %v1224_v36, %v1252_v4 }
 0x67c   :  { %1633 = vmatprep.subr.bf16.mxu1 %v2308_v11  ;;  %2157 = vmatprep.subr.bf16.mxu0 %v2398_v44  ;;  %v1249_v11 = vrot.slane %v1224_v36, %v1248_v5 }
 0x67d   :  { %1663 = vmatprep.mubr.bf16.mxu1 %v2400_v0  ;;  %2171 = vmatprep.mubr.msk.bf16.mxu0 %vm2399_vm0, %v2398_v44 }
 0x67f   :  { %1634 = vmatpush1.bf16.msra.mxu1 %v2306_v12  ;;  %2158 = vmatpush3.bf16.msra.mxu0 %v2309_v13 }
 0x680   :  { %1635 = vmatprep.subr.bf16.mxu1 %v2312_v14  ;;  %2159 = vmatprep.subr.bf16.mxu0 %v2398_v44 }
 0x683   :  { %1636 = vmatpush1.bf16.msra.mxu1 %v2310_v15  ;;  %2160 = vmatpush3.bf16.msra.mxu0 %v2313_v16 }
 0x684   :  { %1637 = vmatprep.subr.bf16.mxu1 %v2316_v17  ;;  %2161 = vmatprep.subr.bf16.mxu0 %v2398_v44 }
 0x687   :  { %1638 = vmatpush1.bf16.msra.mxu1 %v2314_v18  ;;  %2162 = vmatpush3.bf16.msra.mxu0 %v2317_v19 }
 0x688   :  { %1639 = vmatprep.subr.bf16.mxu1 %v2320_v20  ;;  %2163 = vmatprep.subr.bf16.mxu0 %v2398_v44 }
 0x68b   :  { %1640 = vmatpush1.bf16.msra.mxu1 %v2318_v21  ;;  %2164 = vmatpush3.bf16.msra.mxu0 %v2321_v22 }
 0x68c   :  { %1641 = vmatprep.subr.bf16.mxu1 %v2324_v23  ;;  %2165 = vmatprep.subr.bf16.mxu0 %v2398_v44 }
 0x68f   :  { %1642 = vmatpush1.bf16.msra.mxu1 %v2322_v24  ;;  %2166 = vmatpush3.bf16.msra.mxu0 %v2325_v25 }
 0x690   :  { %1643 = vmatprep.subr.bf16.mxu1 %v2328_v26  ;;  %2167 = vmatprep.subr.bf16.mxu0 %v2398_v44 }
 0x693   :  { %1644 = vmatpush1.bf16.msra.mxu1 %v2326_v27  ;;  %2168 = vmatpush3.bf16.msra.mxu0 %v2329_v28 }
 0x694   :  { %1645 = vmatprep.subr.bf16.mxu1 %v2332_v29  ;;  %2169 = vmatprep.subr.bf16.mxu0 %v2398_v44 }
 0x697   :  { %1646 = vmatpush1.bf16.msra.mxu1 %v2330_v30  ;;  %2170 = vmatpush3.bf16.msra.mxu0 %v2333_v31 }
 0x69a   :  { %1664 = vmatmul.mubr.bf16.vlgmr.msra.gmra.mrb[28].mxu1 %v1159_v10  ;;  %2172 = vmatmul.mubr.bf16.vlgmr.msra.gmra.mrb[20].mxu0 %v1159_v10 }
 0x74d   :  { %v1583_v43 = vpop.f32.mrb[24].mxu1  ;;  %v1624_v44 = vpop.f32.mrb[16].mxu0 }
 0x74e   :  { %v1584_v45 = vadd.f32 %v1583_v43, %v1229_v39  ;;  %v1625_v46 = vadd.f32 %v1624_v44, %v1237_v40  ;;  %v1585_v47 = vpop.f32.mrb[25].mxu1  ;;  %v1626_v48 = vpop.f32.mrb[17].mxu0 }
 0x74f   :  { %v1586_v49 = vadd.f32 %v1585_v47, %v1233_v41  ;;  %v1627_v50 = vadd.f32 %v1626_v48, %v1241_v42  ;;  %v1587_v51 = vpop.f32.mrb[26].mxu1  ;;  %v1628_v52 = vpop.f32.mrb[18].mxu0 }
 0x750   :  { %v1949_v53 = vmul.f32 -1.442695, %v1584_v45  ;;  %v1951_v54 = vmul.f32 -1.442695, %v1625_v46  ;;  %v1588_v55 = vpop.f32.mrb[27].mxu1  ;;  %v1629_v56 = vpop.f32.mrb[19].mxu0 }
 0x751   :  { %v1950_v57 = vmul.f32 -1.442695, %v1586_v49  ;;  %v1952_v58 = vmul.f32 -1.442695, %v1627_v50 }
 0x752   :  { %2346 = vpow2.f32 %v1949_v53 }
 0x753   :  { %2348 = vpow2.f32 %v1951_v54 }
 0x754   :  { %2350 = vpow2.f32 %v1950_v57 }
 0x755   :  { %2352 = vpow2.f32 %v1952_v58 }
 0x75c   :  { %v2347_v59 = vpop.eup %2346 }
 0x75d   :  { %v2349_v60 = vpop.eup %2348  ;;  %v1733_v61 = vadd.f32 1.0, %v2347_v59 }
 0x75e   :  { %v2351_v62 = vpop.eup %2350  ;;  %v1735_v63 = vadd.f32 1.0, %v2349_v60 }
 0x75f   :  { %v2353_v0 = vpop.eup %2352  ;;  %2354 = vrcp.f32 %v1733_v61  ;;  %v1734_v1 = vadd.f32 1.0, %v2351_v62 }
 0x760   :  { %2356 = vrcp.f32 %v1735_v63  ;;  %v1736_v2 = vadd.f32 1.0, %v2353_v0 }
 0x761   :  { %2358 = vrcp.f32 %v1734_v1 }
 0x762   :  { %2360 = vrcp.f32 %v1736_v2 }
 0x769   :  { %v2355_v6 = vpop.eup %2354 }
 0x76a   :  { %v2357_v7 = vpop.eup %2356 }
 0x76b   :  { %v2359_v10 = vpop.eup %2358 }
 0x76c   :  { %v2361_v12 = vpop.eup %2360  ;;  %v1960_v13 = vpack.c.bf16 %v2359_v10, %v2355_v6 }
 0x76d   :  { %v1665_v14 = vpop.f32.mrb[28].mxu1  ;;  %v1706_v15 = vpop.f32.mrb[20].mxu0  ;;  %v1961_v16 = vpack.c.bf16 %v2361_v12, %v2357_v7 }
 0x76e   :  { %v1666_v17 = vadd.f32 %v1665_v14, %v1245_v8  ;;  %v1707_v18 = vadd.f32 %v1706_v15, %v1253_v9  ;;  %v1667_v19 = vpop.f32.mrb[29].mxu1  ;;  %v2173_v20 = vpop.f32.mrb[21].mxu0  ;;  %1783 = vst [vmem:[#allocation2] sm:$0xff] %v1960_v13 }
 0x76f   :  { %v1668_v21 = vadd.f32 %v1667_v19, %v1249_v11  ;;  %v1669_v22 = vpop.f32.mrb[30].mxu1  ;;  %v1709_v23 = vpop.f32.mrb[22].mxu0  ;;  %1784 = vst [vmem:[#allocation2 + $0x8] sm:$0xff] %v1961_v16 }
 0x770   :  { %v1953_v24 = vmul.f32 -1.442695, %v1666_v17  ;;  %v1955_v25 = vmul.f32 -1.442695, %v1707_v18  ;;  %v1670_v26 = vpop.f32.mrb[31].mxu1  ;;  %v2174_v27 = vpop.f32.mrb[23].mxu0 }
 0x771   :  { %v1954_v28 = vmul.f32 -1.442695, %v1668_v21 }
 0x772   :  { %2362 = vpow2.f32 %v1953_v24 }
 0x773   :  { %2364 = vpow2.f32 %v1955_v25 }
 0x774   :  { %2366 = vpow2.f32 %v1954_v28 }
 0x77c   :  { %v2363_v29 = vpop.eup %2362 }
 0x77d   :  { %v2365_v30 = vpop.eup %2364  ;;  %v1737_v31 = vadd.f32 1.0, %v2363_v29 }
 0x77e   :  { %v2367_v32 = vpop.eup %2366  ;;  %v1739_v33 = vadd.f32 1.0, %v2365_v30 }
 0x77f   :  { %2368 = vrcp.f32 %v1737_v31  ;;  %v1738_v34 = vadd.f32 1.0, %v2367_v32 }
 0x780   :  { %2370 = vrcp.f32 %v1739_v33 }
 0x781   :  { %2372 = vrcp.f32 %v1738_v34 }
 0x789   :  { %v2369_v35 = vpop.eup %2368 }
 0x78a   :  { %v2371_v36 = vpop.eup %2370 }
 0x78b   :  { %v2373_v37 = vpop.eup %2372  ;;  %v1963_v38 = vpack.c.bf16 %v2371_v36, %v2371_v36 }
 0x78c   :  { %v1962_v39 = vpack.c.bf16 %v2373_v37, %v2369_v35 }
 0x78d   :  { %1787 = vst.msk [vmem:[#allocation2 + $0x18] sm:$0xf] %vm1786_vm5, %v1963_v38 }
 0x78e   :  { %1785 = vst [vmem:[#allocation2 + $0x10] sm:$0xff] %v1962_v39 }
 0x78f   :  { %2385 = shalt.err (!%p2382_p4)
}
 0x790   :  { %s2386_s30 = scalar_lea.hbm %s3025_s18, 448 }
 0x791   :  { %p2387_p5 = scmp.ne.s32.totalorder %s3025_s18, %s2386_s30  ;;  %p2390_p6 = scmp.lt.u32.totalorder %s2386_s30, %s3025_s18 }
 0x793   :  { %p2392_p7 = pnand %p2390_p6, %p2387_p5 }
 0x795   :  { %2395 = shalt.err (!%p2392_p7)
}
 0x796   :  { %1799 = dma.vmem_to_hbm [thread:$0]  %s1797_s16, 448, %s3025_s18, [#allocation3]  }
 0x797   :  { %2396 = dma.done.wait [#allocation3], 448  }
 0x798   :  { %2397 = vsyncadd [#allocation3], 4294966848 }
 0x799   :  { %1805 = vsyncpa [#allocation3], 1 }

</bundles_post_ra>
